<compile_context>
chip_gen: v5e
topology: v5e:2x2
jax: 0.10.0
libtpu: 0.0.40
codegen_flags: <defaults>
</compile_context>

<pallas_src>
import jax
import jax.numpy as jnp
from jax.experimental import pallas as pl
from jax.experimental.pallas import tpu as pltpu

BN_EPS = 1e-5


# --------------------------------------------------------------------------------------
# Kernel 1: 2x2 average pool + per-channel batch statistics (streamed once over x).
# --------------------------------------------------------------------------------------
def _pool_stats_kernel(x_ref, pooled_ref, sum_ref, sq_ref):
    # x_ref:      (TR, 2, Wo, 2*Cin) f32 -- TR vertical row-pairs of the NHWC input; the
    #             two horizontal window elements live in the lane halves [:Cin] / [Cin:].
    # pooled_ref: (TR, Wo, Cin) bf16 -- 2x2 window means.
    # sum_ref:    (1, Cin) f32 -- per-channel sum of raw x (accumulated across the grid).
    # sq_ref:     (1, Cin) f32 -- per-channel sum of squares (accumulated across the grid).
    i = pl.program_id(0)
    cin = pooled_ref.shape[-1]

    xs = x_ref[...]                              # (TR, 2, Wo, 2*Cin)
    vert = jnp.sum(xs, axis=1)                   # vertical pair sum   (TR, Wo, 2*Cin)
    sqv = jnp.sum(xs * xs, axis=1)               # vertical sum of x^2 (TR, Wo, 2*Cin)

    win = vert[:, :, :cin] + vert[:, :, cin:]    # full 2x2 window sum (TR, Wo, Cin)
    sqw = sqv[:, :, :cin] + sqv[:, :, cin:]      # full 2x2 sum of x^2 (TR, Wo, Cin)

    pooled_ref[...] = (0.25 * win).astype(pooled_ref.dtype)

    tile_sum = jnp.sum(jnp.sum(win, axis=0), axis=0, keepdims=True)   # (1, Cin)
    tile_sq = jnp.sum(jnp.sum(sqw, axis=0), axis=0, keepdims=True)    # (1, Cin)

    @pl.when(i == 0)
    def _():
        sum_ref[...] = jnp.zeros_like(sum_ref)
        sq_ref[...] = jnp.zeros_like(sq_ref)

    sum_ref[...] += tile_sum
    sq_ref[...] += tile_sq


# --------------------------------------------------------------------------------------
# Kernel 2: 1x1 conv as a streaming bf16 MXU matmul on the (4x smaller) pooled tensor.
# --------------------------------------------------------------------------------------
def _conv_matmul_kernel(p_ref, w_ref, b_ref, o_ref):
    # p_ref: (TM, Cin) bf16 pooled; w_ref: (Cin, Cout_p) bf16 (BN scale pre-folded);
    # b_ref: (1, Cout_p) f32 folded BN shift; o_ref: (TM, Cout_p) bf16, lane-dense.
    acc = jnp.dot(p_ref[...], w_ref[...], preferred_element_type=jnp.float32)
    o_ref[...] = (acc + b_ref[...]).astype(o_ref.dtype)


# --------------------------------------------------------------------------------------
# Tile sizing helpers (VMEM-budget aware, never fall back to "whole array" for kernel 1).
# --------------------------------------------------------------------------------------
def _vmem_budget_and_limit():
    """Return (tile-sizing budget bytes, vmem_limit_bytes or None)."""
    try:
        cap = getattr(pltpu.get_tpu_info(), "vmem_capacity_bytes", None)
    except Exception:
        cap = None
    if cap is None:
        # Unknown chip: assume the 32 MiB default scoped limit and don't raise it.
        return int(0.7 * (32 << 20)), None
    # Raise the scoped limit towards physical capacity with headroom:
    # ~96 MiB on v5e/v6e (128 MiB physical), ~48 MiB on v7x (64 MiB physical).
    limit = min(int(cap * 0.75), 96 << 20)
    return int(limit * 0.8), limit


def _largest_divisor(n, cap, multiple=1):
    """Largest t <= cap with t % multiple == 0 and n % t == 0 (None if no such t)."""
    cap = min(n, max(cap, multiple))
    t = (cap // multiple) * multiple
    while t >= multiple:
        if n % t == 0:
            return t
        t -= multiple
    return None


# --------------------------------------------------------------------------------------
# Wrapper
# --------------------------------------------------------------------------------------
def transition_layer(x_nchw, gamma, beta, conv_weight, *, tile_rows=None, tile_m=None):
    """BatchNorm2d (train-mode batch stats) -> Conv2d 1x1 (no bias) -> AvgPool2d(2,2).

    x_nchw: (N, Cin, H, W) f32.  conv_weight: (Cout, Cin, 1, 1) (PyTorch layout).
    Returns (N, Cout, H//2, W//2) f32.
    Note: nn.BatchNorm2d's running-stat (momentum) buffer update is a training-state side
    effect and is not part of the returned forward value, so it is not computed here.
    """
    n, cin, h, w = x_nchw.shape
    assert h % 2 == 0 and w % 2 == 0, "AvgPool2d(2,2) expects even spatial dims"
    cout = conv_weight.shape[0]
    ho, wo = h // 2, w // 2
    rows = n * ho                           # vertical 2x2-window row-pairs
    m = rows * wo                           # pooled spatial positions
    cout_p = ((cout + 127) // 128) * 128    # lane-dense output channels

    budget, vmem_limit = _vmem_budget_and_limit()

    # Kernel-1 per-step VMEM: x block (f32, x2 buffers) + pooled block (bf16, x2 buffers)
    # ~= 36 * TR * Wo * Cin bytes.
    if tile_rows is None:
        cap_r = max(1, budget // (36 * wo * cin))
        tile_rows = _largest_divisor(rows, cap_r, 1)     # always >= 1
    assert rows % tile_rows == 0, (rows, tile_rows)

    # Kernel-2 tile is decoupled and larger (pooled is bf16 and 4x smaller than x).
    if tile_m is None:
        fixed = 4 * cin * cout_p + 8 * cout_p            # resident folded weight + bias
        cap_m = min(4096, max(8, (budget - fixed) // (4 * (cin + cout_p))))
        tile_m = _largest_divisor(m, cap_m, 8)
        if tile_m is None:
            tile_m = m       # full extent always satisfies the (8,128) layout rule
    assert m % tile_m == 0, (m, tile_m)

    # ---- layout plumbing: one NCHW->NHWC transpose, then FREE reshapes only ----
    x_nhwc = jnp.transpose(x_nchw.astype(jnp.float32), (0, 2, 3, 1))
    # (N, H, W, Cin) -> (N*Ho, 2, Wo, 2*Cin): pure row-major regrouping, no data movement.
    x_view = x_nhwc.reshape(rows, 2, wo, 2 * cin)

    # ---- kernel 1: streamed 2x2 pooling + per-channel batch statistics ----
    k1_bytes = 4 * m * cin * 4 + m * cin * 2 + 8 * cin
    pooled, chan_sum, chan_sq = pl.pallas_call(
        _pool_stats_kernel,
        out_shape=(
            jax.ShapeDtypeStruct((rows, wo, cin), jnp.bfloat16),
            jax.ShapeDtypeStruct((1, cin), jnp.float32),
            jax.ShapeDtypeStruct((1, cin), jnp.float32),
        ),
        grid_spec=pltpu.PrefetchScalarGridSpec(
            num_scalar_prefetch=0,
            grid=(rows // tile_rows,),
            in_specs=[pl.BlockSpec((tile_rows, 2, wo, 2 * cin), lambda i: (i, 0, 0, 0))],
            out_specs=(
                pl.BlockSpec((tile_rows, wo, cin), lambda i: (i, 0, 0)),
                pl.BlockSpec((1, cin), lambda i: (0, 0)),
                pl.BlockSpec((1, cin), lambda i: (0, 0)),
            ),
        ),
        compiler_params=pltpu.CompilerParams(
            # Stats accumulate into constant-index output blocks -> must stay sequential.
            dimension_semantics=("arbitrary",),
            vmem_limit_bytes=vmem_limit,
        ),
        cost_estimate=pl.CostEstimate(
            flops=12 * m * cin, transcendentals=0, bytes_accessed=k1_bytes),
    )(x_view)

    # ---- parameter-sized BN fold (O(Cin*Cout), negligible vs the streaming passes) ----
    inv_count = 1.0 / float(n * h * w)
    mean = chan_sum * inv_count                                    # (1, Cin)
    var = jnp.maximum(chan_sq * inv_count - mean * mean, 0.0)      # clamp one-pass variance
    s = gamma.reshape(1, cin).astype(jnp.float32) * jax.lax.rsqrt(var + BN_EPS)
    b = beta.reshape(1, cin).astype(jnp.float32) - mean * s
    w_mat = conv_weight[:, :, 0, 0].astype(jnp.float32).T          # (Cin, Cout)
    w_pad = jnp.pad(w_mat, ((0, 0), (0, cout_p - cout)))           # (Cin, Cout_p)
    w_scaled = (w_pad * jnp.transpose(s)).astype(jnp.bfloat16)     # diag(s) @ W
    bias_row = jnp.dot(b, w_pad)                                   # (1, Cout_p) f32

    # ---- kernel 2: streaming bf16 MXU matmul with folded BN ----
    pooled2d = pooled.reshape(m, cin)                              # free reshape
    k2_bytes = m * cin * 2 + cin * cout_p * 2 + cout_p * 4 + m * cout_p * 2
    out_flat = pl.pallas_call(
        _conv_matmul_kernel,
        out_shape=jax.ShapeDtypeStruct((m, cout_p), jnp.bfloat16),
        grid_spec=pltpu.PrefetchScalarGridSpec(
            num_scalar_prefetch=0,
            grid=(m // tile_m,),
            in_specs=[
                pl.BlockSpec((tile_m, cin), lambda i: (i, 0)),
                pl.BlockSpec((cin, cout_p), lambda i: (0, 0)),
                pl.BlockSpec((1, cout_p), lambda i: (0, 0)),
            ],
            out_specs=pl.BlockSpec((tile_m, cout_p), lambda i: (i, 0)),
        ),
        compiler_params=pltpu.CompilerParams(
            dimension_semantics=("parallel",),     # independent tiles -> megacore friendly
            vmem_limit_bytes=vmem_limit,
        ),
        cost_estimate=pl.CostEstimate(
            flops=2 * m * cin * cout_p + m * cout_p,
            transcendentals=0, bytes_accessed=k2_bytes),
    )(pooled2d, w_scaled, bias_row)

    # Drop lane padding, back to NCHW f32 (fused slice + reshape + transpose + cast).
    out = out_flat[:, :cout].reshape(n, ho, wo, cout)
    return jnp.transpose(out, (0, 3, 1, 2)).astype(jnp.float32)


def transition_layer_ref(x_nchw, gamma, beta, conv_weight):
    """Pure-JAX f32 reference (same semantics, different code path) for verification."""
    n, cin, h, w = x_nchw.shape
    cout = conv_weight.shape[0]
    mean = jnp.mean(x_nchw, axis=(0, 2, 3), keepdims=True)
    var = jnp.mean((x_nchw - mean) ** 2, axis=(0, 2, 3), keepdims=True)
    xn = (x_nchw - mean) / jnp.sqrt(var + BN_EPS)
    xn = xn * gamma.reshape(1, cin, 1, 1) + beta.reshape(1, cin, 1, 1)
    y = jnp.einsum("nchw,oc->nohw", xn, conv_weight[:, :, 0, 0])
    y = y.reshape(n, cout, h // 2, 2, w // 2, 2).mean(axis=(3, 5))
    return y


if __name__ == "__main__":
    # Small shapes consistent with the module: input_size=4 channels, compression=0.5.
    N, C_IN, H, W = 2, 4, 16, 16
    COMPRESSION = 0.5
    C_OUT = int(C_IN * COMPRESSION)

    key = jax.random.PRNGKey(0)
    kx, kw, kg, kb = jax.random.split(key, 4)

    x = jax.random.normal(kx, (N, C_IN, H, W), dtype=jnp.float32)
    # Non-trivial BN affine params to exercise the fold (PyTorch defaults are 1/0).
    gamma = 1.0 + 0.1 * jax.random.normal(kg, (C_IN,), dtype=jnp.float32)
    beta = 0.1 * jax.random.normal(kb, (C_IN,), dtype=jnp.float32)
    conv_w = jax.random.normal(kw, (C_OUT, C_IN, 1, 1), dtype=jnp.float32) * (2.0 / C_IN) ** 0.5

    # Small explicit tiles so both grids take multiple steps (exercises the tiled stats
    # accumulation in kernel 1 and the tiled matmul in kernel 2).
    out = transition_layer(x, gamma, beta, conv_w, tile_rows=4, tile_m=32)
    out = jax.block_until_ready(out)

    ref = jax.block_until_ready(transition_layer_ref(x, gamma, beta, conv_w))

    assert out.shape == (N, C_OUT, H // 2, W // 2), out.shape
    # bf16 MXU operands + bf16 pooled/output stores -> tolerance looser than pure f32.
    assert jnp.allclose(out, ref, atol=2e-2, rtol=2e-2), float(jnp.max(jnp.abs(out - ref)))
    print("KERNEL_OK")
</pallas_src>

<mosaic_0001>
module attributes {stable_mosaic.version = 11 : i64} {
  func.func @_pool_stats_kernel(%arg0: i32, %arg1: memref<4x2x8x8xf32, #tpu.memory_space<vmem>>, %arg2: memref<4x8x4xbf16, #tpu.memory_space<vmem>>, %arg3: memref<1x4xf32, #tpu.memory_space<vmem>>, %arg4: memref<1x4xf32, #tpu.memory_space<vmem>>) attributes {dimension_semantics = [#tpu.dimension_semantics<arbitrary>], iteration_bounds = array<i64: 4>, scalar_prefetch = 0 : i64, scratch_operands = 0 : i64, tpu.core_type = #tpu.core_type<tc>, window_params = [{transform_indices = @transform_0, window_bounds = array<i64: 4, 2, 8, 8>}, {transform_indices = @transform_1, window_bounds = array<i64: 4, 8, 4>}, {pipeline_mode = #tpu.pipeline_mode<synchronous>, transform_indices = @transform_2, window_bounds = array<i64: 1, 4>}, {pipeline_mode = #tpu.pipeline_mode<synchronous>, transform_indices = @transform_3, window_bounds = array<i64: 1, 4>}]} {
    %c0 = arith.constant 0 : index
    %c0_0 = arith.constant 0 : index
    %c0_1 = arith.constant 0 : index
    %c0_2 = arith.constant 0 : index
    %0 = vector.load %arg1[%c0, %c0_0, %c0_1, %c0_2] : memref<4x2x8x8xf32, #tpu.memory_space<vmem>>, vector<4x2x8x8xf32>
    %cst = arith.constant dense<0.000000e+00> : vector<4x8x8xf32>
    %1 = vector.multi_reduction <add>, %0, %cst [1] : vector<4x2x8x8xf32> to vector<4x8x8xf32>
    %2 = arith.mulf %0, %0 : vector<4x2x8x8xf32>
    %cst_3 = arith.constant dense<0.000000e+00> : vector<4x8x8xf32>
    %3 = vector.multi_reduction <add>, %2, %cst_3 [1] : vector<4x2x8x8xf32> to vector<4x8x8xf32>
    %4 = vector.extract_strided_slice %1 {offsets = [0, 0, 0], sizes = [4, 8, 4], strides = [1, 1, 1]} : vector<4x8x8xf32> to vector<4x8x4xf32>
    %5 = vector.extract_strided_slice %1 {offsets = [0, 0, 4], sizes = [4, 8, 4], strides = [1, 1, 1]} : vector<4x8x8xf32> to vector<4x8x4xf32>
    %6 = arith.addf %4, %5 : vector<4x8x4xf32>
    %7 = vector.extract_strided_slice %3 {offsets = [0, 0, 0], sizes = [4, 8, 4], strides = [1, 1, 1]} : vector<4x8x8xf32> to vector<4x8x4xf32>
    %8 = vector.extract_strided_slice %3 {offsets = [0, 0, 4], sizes = [4, 8, 4], strides = [1, 1, 1]} : vector<4x8x8xf32> to vector<4x8x4xf32>
    %9 = arith.addf %7, %8 : vector<4x8x4xf32>
    %cst_4 = arith.constant 2.500000e-01 : f32
    %10 = vector.broadcast %cst_4 : f32 to vector<4x8x4xf32>
    %11 = arith.mulf %10, %6 : vector<4x8x4xf32>
    %12 = arith.truncf %11 : vector<4x8x4xf32> to vector<4x8x4xbf16>
    %c0_5 = arith.constant 0 : index
    %c0_6 = arith.constant 0 : index
    %c0_7 = arith.constant 0 : index
    %13 = vector.load %arg2[%c0_5, %c0_6, %c0_7] : memref<4x8x4xbf16, #tpu.memory_space<vmem>>, vector<4x8x4xbf16>
    tpu.vector_store %arg2[%c0_5, %c0_6, %c0_7], %12 {strides = array<i32>} : memref<4x8x4xbf16, #tpu.memory_space<vmem>>, vector<4x8x4xbf16>,
    %cst_8 = arith.constant dense<0.000000e+00> : vector<8x4xf32>
    %14 = vector.multi_reduction <add>, %6, %cst_8 [0] : vector<4x8x4xf32> to vector<8x4xf32>
    %cst_9 = arith.constant dense<0.000000e+00> : vector<4xf32>
    %15 = vector.multi_reduction <add>, %14, %cst_9 [0] : vector<8x4xf32> to vector<4xf32>
    %16 = vector.shape_cast %15 : vector<4xf32> to vector<1x4xf32>
    %cst_10 = arith.constant dense<0.000000e+00> : vector<8x4xf32>
    %17 = vector.multi_reduction <add>, %9, %cst_10 [0] : vector<4x8x4xf32> to vector<8x4xf32>
    %cst_11 = arith.constant dense<0.000000e+00> : vector<4xf32>
    %18 = vector.multi_reduction <add>, %17, %cst_11 [0] : vector<8x4xf32> to vector<4xf32>
    %19 = vector.shape_cast %18 : vector<4xf32> to vector<1x4xf32>
    %c0_i32 = arith.constant 0 : i32
    %20 = arith.cmpi eq, %arg0, %c0_i32 : i32
    %21 = arith.extui %20 : i1 to i32
    %c0_i32_12 = arith.constant 0 : i32
    %22 = arith.cmpi ne, %21, %c0_i32_12 : i32
    scf.if %22 {
      %cst_21 = arith.constant 0.000000e+00 : f32
      %29 = vector.broadcast %cst_21 : f32 to vector<1x4xf32>
      %c0_22 = arith.constant 0 : index
      %c0_23 = arith.constant 0 : index
      %30 = vector.load %arg3[%c0_22, %c0_23] : memref<1x4xf32, #tpu.memory_space<vmem>>, vector<1x4xf32>
      tpu.vector_store %arg3[%c0_22, %c0_23], %29 {strides = array<i32>} : memref<1x4xf32, #tpu.memory_space<vmem>>, vector<1x4xf32>,
      %cst_24 = arith.constant 0.000000e+00 : f32
      %31 = vector.broadcast %cst_24 : f32 to vector<1x4xf32>
      %c0_25 = arith.constant 0 : index
      %c0_26 = arith.constant 0 : index
      %32 = vector.load %arg4[%c0_25, %c0_26] : memref<1x4xf32, #tpu.memory_space<vmem>>, vector<1x4xf32>
      tpu.vector_store %arg4[%c0_25, %c0_26], %31 {strides = array<i32>} : memref<1x4xf32, #tpu.memory_space<vmem>>, vector<1x4xf32>,
    } else {
    }
    %c0_13 = arith.constant 0 : index
    %c0_14 = arith.constant 0 : index
    %23 = vector.load %arg3[%c0_13, %c0_14] : memref<1x4xf32, #tpu.memory_space<vmem>>, vector<1x4xf32>
    %24 = arith.addf %23, %16 : vector<1x4xf32>
    %c0_15 = arith.constant 0 : index
    %c0_16 = arith.constant 0 : index
    %25 = vector.load %arg3[%c0_15, %c0_16] : memref<1x4xf32, #tpu.memory_space<vmem>>, vector<1x4xf32>
    tpu.vector_store %arg3[%c0_15, %c0_16], %24 {strides = array<i32>} : memref<1x4xf32, #tpu.memory_space<vmem>>, vector<1x4xf32>,
    %c0_17 = arith.constant 0 : index
    %c0_18 = arith.constant 0 : index
    %26 = vector.load %arg4[%c0_17, %c0_18] : memref<1x4xf32, #tpu.memory_space<vmem>>, vector<1x4xf32>
    %27 = arith.addf %26, %19 : vector<1x4xf32>
    %c0_19 = arith.constant 0 : index
    %c0_20 = arith.constant 0 : index
    %28 = vector.load %arg4[%c0_19, %c0_20] : memref<1x4xf32, #tpu.memory_space<vmem>>, vector<1x4xf32>
    tpu.vector_store %arg4[%c0_19, %c0_20], %27 {strides = array<i32>} : memref<1x4xf32, #tpu.memory_space<vmem>>, vector<1x4xf32>,
    return
  }
  func.func @transform_0(%arg0: i32) -> (i32, i32, i32, i32) {
    %c0_i32 = arith.constant 0 : i32
    %c0_i32_0 = arith.constant 0 : i32
    %c0_i32_1 = arith.constant 0 : i32
    %c0_i32_2 = arith.constant 0 : i32
    return %arg0, %c0_i32, %c0_i32_0, %c0_i32_1 : i32, i32, i32, i32
  }
  func.func @transform_1(%arg0: i32) -> (i32, i32, i32) {
    %c0_i32 = arith.constant 0 : i32
    %c0_i32_0 = arith.constant 0 : i32
    %c0_i32_1 = arith.constant 0 : i32
    return %arg0, %c0_i32, %c0_i32_0 : i32, i32, i32
  }
  func.func @transform_2(%arg0: i32) -> (i32, i32) {
    %c0_i32 = arith.constant 0 : i32
    %c0_i32_0 = arith.constant 0 : i32
    %c0_i32_1 = arith.constant 0 : i32
    return %c0_i32, %c0_i32_0 : i32, i32
  }
  func.func @transform_3(%arg0: i32) -> (i32, i32) {
    %c0_i32 = arith.constant 0 : i32
    %c0_i32_0 = arith.constant 0 : i32
    %c0_i32_1 = arith.constant 0 : i32
    return %c0_i32, %c0_i32_0 : i32, i32
  }
}

</mosaic_0001>

<bundles_post_ra>
// kernel: tpu_custom_call.1
= control target key start
LH: loop header
LB: loop body
LE: loop exit
PB: predicated region body
PF: predicated region fallthrough
CT: control target
= control target key end

     0   :  { %9 = vsyncpa [#allocation3], 0  ;;  %s653_s0 = inlined_call_operand.vmem [shape: f32[16,2,8,8], index: 0, kind: input, shape index: {}]   ;;  %s654_s1 = inlined_call_operand.vmem [shape: bf16[16,8,4], index: 1, kind: output, shape index: {0}]   ;;  %s655_s2 = inlined_call_operand.hbm [shape: f32[1,4], index: 2, kind: output, shape index: {1}]   ;;  %s656_s3 = inlined_call_operand.hbm [shape: f32[1,4], index: 3, kind: output, shape index: {2}]  }
   0x1   :  { %10 = vsyncpa [#allocation5], 0  ;;  %s555_s12 = smov 0  }
   0x2 LB: > { %s561_s13 = sadd.s32 4294967295, %s529_s12   ;;  %p421_p0 = scmp.ge.s32.totalorder %s529_s12, 1  ;;  %s529_s12 = sphi %s555_s12, %s16_s12  }
   0x3   : > { %p136_p1 = scmp.lt.s32.totalorder %s529_s12, 5 }
   0x5   : > { %p137_p2 = pnand %p421_p0, %p136_p1 }
   0x6   : > { %s422_s14 = sshll.u32 (!%p137_p2), %s561_s13, 2  ;;  %s531_s19 = smov (!%p137_p2), 124  }
   0x7   : > { %140 = sbr.rel (%p137_p2) target bundleno = 187 (0xbb), region = 24  ;;  %p162_p3 = scmp.lt.s32.totalorder (!%p137_p2), %s422_s14, 15 }
   0x8   : > { %p427_p4 = scmp.ne.s32.totalorder (!%p137_p2), %s561_s13, 0 }
   0xc   : > { %s658_s14 = smov (!%p162_p3, %s422_s14), 15  ;;  %vm182_vm0 = vcmask 64512   ;;  %vm263_vm1 = vcmask 27648   ;;  %vm268_vm2 = vcmask 31744  }
   0xd   : > { %s434_s15 = sshll.u32 %s658_s14, 4  ;;  %s426_s20 = sshll.u32 %s658_s14, 2 }
   0xe   : > { %s572_s18 = scalar_lea.vmem %s653_s0, %s434_s15  ;;  %s610_s23 = scalar_lea.vmem %s654_s1, %s426_s20 }
   0xf   : > { %v174_v0 = vld [vmem:[%s572_s18] sm:$0xff]  ;;  %v175_v1 = vld [vmem:[%s572_s18 + $0x8] sm:$0xff]  ;;  %v176_v2 = vld [vmem:[%s572_s18 + $0x10] sm:$0xff] }
  0x10   : > { %v183_v3 = vsel %vm182_vm0, %v174_v0, 0.0  ;;  %v184_v4 = vsel %vm182_vm0, %v175_v1, 0.0  ;;  %v195_v5 = vmul.f32 %v174_v0, %v174_v0  ;;  %v196_v6 = vmul.f32 %v175_v1, %v175_v1  ;;  %v177_v7 = vld [vmem:[%s572_s18 + $0x18] sm:$0xff]  ;;  %v178_v13 = vld [vmem:[%s572_s18 + $0x20] sm:$0xff]  ;;  %v179_v14 = vld [vmem:[%s572_s18 + $0x28] sm:$0xff] }
  0x11   : > { %v185_v8 = vadd.f32 %v184_v4, %v183_v3  ;;  %v197_v11 = vmul.f32 %v176_v2, %v176_v2  ;;  %v198_v12 = vmul.f32 %v177_v7, %v177_v7  ;;  %v186_v16 = vsel %vm182_vm0, %v176_v2, 0.0  ;;  %v180_v26 = vld [vmem:[%s572_s18 + $0x30] sm:$0xff]  ;;  %v181_v27 = vld [vmem:[%s572_s18 + $0x38] sm:$0xff] }
  0x12   : > { %v203_v9 = vsel %vm182_vm0, %v195_v5, 0.0  ;;  %v204_v10 = vsel %vm182_vm0, %v196_v6, 0.0  ;;  %v187_v17 = vsel %vm182_vm0, %v177_v7, 0.0  ;;  %v189_v18 = vsel %vm182_vm0, %v178_v13, 0.0 }
  0x13   : > { %219 = vrot.lane.b32.xlu0 %v185_v8, %s531_s19  ;;  %v205_v15 = vadd.f32 %v204_v10, %v203_v9  ;;  %v190_v19 = vsel %vm182_vm0, %v179_v14, 0.0  ;;  %v199_v20 = vmul.f32 %v178_v13, %v178_v13  ;;  %v206_v21 = vsel %vm182_vm0, %v197_v11, 0.0 }
  0x14   : > { %v207_v22 = vsel %vm182_vm0, %v198_v12, 0.0  ;;  %v191_v23 = vadd.f32 %v190_v19, %v189_v18  ;;  %v200_v24 = vmul.f32 %v179_v14, %v179_v14  ;;  %v188_v25 = vadd.f32 %v187_v17, %v186_v16 }
  0x15   : > { %239 = vrot.lane.b32.xlu1 %v205_v15, %s531_s19  ;;  %v208_v28 = vadd.f32 %v207_v22, %v206_v21  ;;  %v209_v29 = vsel %vm182_vm0, %v199_v20, 0.0  ;;  %v201_v31 = vmul.f32 %v180_v26, %v180_v26  ;;  %v202_v32 = vmul.f32 %v181_v27, %v181_v27 }
  0x16   : > { %223 = vrot.lane.b32.xlu2 %v191_v23, %s531_s19  ;;  %v210_v30 = vsel %vm182_vm0, %v200_v24, 0.0  ;;  %v192_v33 = vsel %vm182_vm0, %v180_v26, 0.0  ;;  %v193_v34 = vsel %vm182_vm0, %v181_v27, 0.0 }
  0x17   : > { %v211_v35 = vadd.f32 %v210_v30, %v209_v29  ;;  %v212_v36 = vsel %vm182_vm0, %v201_v31, 0.0  ;;  %v213_v37 = vsel %vm182_vm0, %v202_v32, 0.0  ;;  %v194_v38 = vadd.f32 %v193_v34, %v192_v33 }
  0x18   : > { %v214_v39 = vadd.f32 %v213_v37, %v212_v36 }
  0x1b   : > { %221 = vrot.lane.b32.xlu0 %v188_v25, %s531_s19 }
  0x1d   : > { %241 = vrot.lane.b32.xlu1 %v208_v28, %s531_s19 }
  0x1e   : > { %243 = vrot.lane.b32.xlu2 %v211_v35, %s531_s19 }
  0x23   : > { %225 = vrot.lane.b32.xlu0 %v194_v38, %s531_s19 }
  0x25   : > { %245 = vrot.lane.b32.xlu1 %v214_v39, %s531_s19 }
  0x70   : > { %v224_v40 = vpop.permute.xlu2 %223 }
  0x71   : > { %v233_v41 = vadd.f32 %v224_v40, %v191_v23 }
  0x73   : > { %v257_v42 = vmul.f32 0.25, %v233_v41  ;;  %v272_v1 = vsel %vm268_vm2, %v233_v41, 0.0 }
  0x75   : > { %v261_v43 = vpack.c.bf16 %v257_v42, %v257_v42 }
  0x77   : > { %266 = vst.msk [vmem:[%s610_s23 + $0x8] sm:$0xf] %vm263_vm1, %v261_v43 }
  0x78   : > { %v244_v52 = vpop.permute.xlu2 %243 }
  0x79   : > { %v253_v60 = vadd.f32 %v244_v52, %v211_v35 }
  0x7b   : > { %v286_v2 = vsel %vm268_vm2, %v253_v60, 0.0 }
  0x85   : > { %v220_v44 = vpop.permute.xlu0 %219 }
  0x86   : > { %v231_v45 = vadd.f32 %v220_v44, %v185_v8 }
  0x87   : > { %v240_v46 = vpop.permute.xlu1 %239 }
  0x88   : > { %v255_v47 = vmul.f32 0.25, %v231_v45  ;;  %v251_v53 = vadd.f32 %v240_v46, %v205_v15  ;;  %v269_v57 = vsel %vm268_vm2, %v231_v45, 0.0 }
  0x8a   : > { %v259_v48 = vpack.c.bf16 %v255_v47, %v255_v47  ;;  %v283_v62 = vsel %vm268_vm2, %v251_v53, 0.0 }
  0x8c   : > { %264 = vst.msk [vmem:[%s610_s23] sm:$0xf] %vm263_vm1, %v259_v48 }
  0x8d   : > { %v222_v49 = vpop.permute.xlu0 %221 }
  0x8e   : > { %v232_v50 = vadd.f32 %v222_v49, %v188_v25 }
  0x8f   : > { %v242_v51 = vpop.permute.xlu1 %241 }
  0x90   : > { %v256_v54 = vmul.f32 0.25, %v232_v50  ;;  %v270_v55 = vsel %vm268_vm2, %v232_v50, 0.0  ;;  %v252_v56 = vadd.f32 %v242_v51, %v208_v28 }
  0x91   : > { %v271_v61 = vadd.f32 %v270_v55, %v269_v57 }
  0x92   : > { %v260_v58 = vpack.c.bf16 %v256_v54, %v256_v54  ;;  %v284_v59 = vsel %vm268_vm2, %v252_v56, 0.0 }
  0x93   : > { %v285_v63 = vadd.f32 %v284_v59, %v283_v62  ;;  %v273_v4 = vadd.f32 %v272_v1, %v271_v61 }
  0x94   : > { %265 = vst.msk [vmem:[%s610_s23 + $0x4] sm:$0xf] %vm263_vm1, %v260_v58 }
  0x95   : > { %v226_v0 = vpop.permute.xlu0 %225  ;;  %v287_v9 = vadd.f32 %v286_v2, %v285_v63 }
  0x96   : > { %v234_v3 = vadd.f32 %v226_v0, %v194_v38 }
  0x97   : > { %v246_v5 = vpop.permute.xlu1 %245 }
  0x98   : > { %v258_v6 = vmul.f32 0.25, %v234_v3  ;;  %v274_v7 = vsel %vm268_vm2, %v234_v3, 0.0  ;;  %v254_v8 = vadd.f32 %v246_v5, %v214_v39 }
  0x99   : > { %v275_v10 = vadd.f32 %v274_v7, %v273_v4 }
  0x9a   : > { %v262_v11 = vpack.c.bf16 %v258_v6, %v258_v6  ;;  %v288_v12 = vsel %vm268_vm2, %v254_v8, 0.0 }
  0x9b   : > { %v276_v13 = vsel %vm268_vm2, %v275_v10, 0.0  ;;  %v289_v14 = vadd.f32 %v288_v12, %v287_v9 }
  0x9c   : > { %267 = vst.msk [vmem:[%s610_s23 + $0xc] sm:$0xf] %vm263_vm1, %v262_v11  ;;  %v277_v15 = vrot.slane %v276_v13, 4 }
  0x9d   : > { %v290_v16 = vsel %vm268_vm2, %v289_v14, 0.0 }
  0x9e   : > { %v278_v17 = vadd.f32 %v277_v15, %v276_v13  ;;  %v291_v18 = vrot.slane %v290_v16, 4 }
  0xa0   : > { %v279_v19 = vrot.slane %v278_v17, 2  ;;  %v292_v20 = vadd.f32 %v291_v18, %v290_v16 }
  0xa2   : > { %v280_v21 = vadd.f32 %v279_v19, %v278_v17  ;;  %v293_v22 = vrot.slane %v292_v20, 2 }
  0xa4   : > { %v281_v23 = vrot.slane %v280_v21, 1  ;;  %v294_v24 = vadd.f32 %v293_v22, %v292_v20  ;;  %300 = sbr.rel (%p427_p4) target bundleno = 172 (0xac), region = 28 }
  0xa6   : > { %v282_v25 = vadd.f32 %v281_v23, %v280_v21  ;;  %v295_v26 = vrot.slane %v294_v24, 1 }
  0xa8   : > { %v296_v27 = vadd.f32 %v295_v26, %v294_v24 }
  0xa9   : > { %vm301_vm3 = vcmask 24576   ;;  %v532_v28 = vmov 0.0  }
  0xaa   : > { %302 = vst.msk [vmem:[#allocation2] sm:$0x1] %vm301_vm3, %v532_v28 }
  0xab   : > { %303 = vst.msk [vmem:[#allocation4] sm:$0x1] %vm301_vm3, %v532_v28 }
  0xac PF: > { %vm306_vm4 = vcmask 24576   ;;  %p443_p5 = scmp.eq.s32.totalorder %s561_s13, 3  ;;  %s533_s24 = smov [#allocation2]  }
  0xad   : > { %s326_s25 = sshll.u32 %s533_s24, 4  ;;  %s328_s28 = sshll.u32 %s655_s2, 4  ;;  %s327_s25 = int_to_ptr.vmem [resolvable:$true] %s326_s25  ;;  %s329_s28 = int_to_ptr.hbm [resolvable:$true] %s328_s28 }
  0xae   : > { %s340_s4 = sshll.u32 %s656_s3, 4  ;;  %s534_s5 = smov [#allocation4]   ;;  %s341_s4 = int_to_ptr.hbm [resolvable:$true] %s340_s4 }
  0xaf   : > { %s338_s6 = sshll.u32 %s534_s5, 4  ;;  %s339_s6 = int_to_ptr.vmem [resolvable:$true] %s338_s6 }
  0xb1   : > { %v304_v29 = vld [vmem:[#allocation2] sm:$0x1] }
  0xb2   : > { %v308_v30 = vld [vmem:[#allocation4] sm:$0x1]  ;;  %v305_v31 = vadd.f32 %v304_v29, %v282_v25 }
  0xb3   : > { %v309_v32 = vadd.f32 %v308_v30, %v296_v27 }
  0xb4   : > { %307 = vst.msk [vmem:[#allocation2] sm:$0x1] %vm306_vm4, %v305_v31 }
  0xb5   : > { %310 = vst.msk [vmem:[#allocation4] sm:$0x1] %vm306_vm4, %v309_v32  ;;  %436 = dma.vmem_to_hbm [thread:$0]  (%p443_p5), %s327_s25, 16, %s329_s28, [#allocation3]  }
  0xb6   : > { %438 = dma.vmem_to_hbm [thread:$0]  (%p443_p5), %s339_s6, 16, %s341_s4, [#allocation5]  }
  0xb7   : > { %520 = dma.done.wait (%p443_p5), [#allocation3], 16  }
  0xb8   : > { %522 = vsyncadd (%p443_p5), [#allocation3], 4294967280 }
  0xb9   : > { %524 = dma.done.wait (%p443_p5), [#allocation5], 16  }
  0xba   : > { %526 = vsyncadd (%p443_p5), [#allocation5], 4294967280 }
  0xbb PF: > { %s16_s12 = sadd.s32 1, %s529_s12  }
  0xbc   : > { %p13_p6 = scmp.ge.s32.totalorder %s16_s12, 6  }
  0xbe   :  { %15 = sbr.rel (!%p13_p6) target bundleno = 2 (0x2), region = 75 }
  0xc3   :  { %367 = vsyncpa [#allocation3], 1 }
  0xc4   :  { %369 = vsyncpa [#allocation3 + $0x1], 1 }
  0xc5   :  { %370 = vsyncpa [#allocation5], 1 }

</bundles_post_ra>
